<compile_context>
chip_gen: v7x
topology: tpu7x:2x2x1
jax: 0.10.0
libtpu: 0.0.40
codegen_flags: <defaults>
</compile_context>

<pallas_src>
import math
import functools

import jax
import jax.numpy as jnp
from jax import lax
from jax.experimental import pallas as pl
from jax.experimental.pallas import tpu as pltpu


# --------------------- generation-aware sizing helpers ---------------------

def _vmem_capacity_bytes():
    try:
        info = pltpu.get_tpu_info()
        cap = getattr(info, "vmem_capacity_bytes", None)
        if cap:
            return int(cap)
    except Exception:
        pass
    return 128 * 1024 * 1024  # v5e/v6e default


def _vmem_limit_bytes():
    cap = _vmem_capacity_bytes()
    # ~51 MiB on v7x (64 MiB physical), ~102 MiB (capped at 110) on v5e/v6e.
    return int(min(cap * 0.8, 110 * 1024 * 1024))


def _pick_tile(dim, cap):
    """Largest tile <= cap that exactly divides dim, preferring 128-multiples."""
    for t in range(cap, 0, -128):           # lane/sublane friendly first
        if t <= dim and dim % t == 0:
            return t
    for t in range(min(cap, dim), 0, -8):   # multiple-of-8 divisors
        if dim % t == 0:
            return t
    return dim                              # full dim is always legal


def _weight_spec(shape, index_map, buffered):
    # Constant-index weight blocks: request single-buffering (review item 4).
    if buffered:
        return pl.BlockSpec(shape, index_map, pipeline_mode=pl.Buffered(1))
    return pl.BlockSpec(shape, index_map)


# -------------------------------- kernels ----------------------------------

def _qkv_proj_kernel(x_ref, w_in_t_ref, b_in_ref, q_ref, k_ref, v_ref):
    """One K=E matmul per sequence tile; Q rows already carry 1/sqrt(D)."""
    E = x_ref.shape[2]
    mm_dtype = q_ref.dtype
    qkv = jnp.dot(x_ref[0], w_in_t_ref[...],
                  preferred_element_type=jnp.float32) + b_in_ref[0]  # (ts, 3E) f32
    q_ref[0] = qkv[:, 0 * E:1 * E].astype(mm_dtype)
    k_ref[0] = qkv[:, 1 * E:2 * E].astype(mm_dtype)
    v_ref[0] = qkv[:, 2 * E:3 * E].astype(mm_dtype)


def _flash_attn_kernel(q_ref, k_ref, v_ref, w_out_t_ref, b_out_ref, o_ref,
                       m_ref, l_ref, acc_ref, *, num_heads):
    """Online-softmax attention over KV tiles + single K=E out-proj epilogue."""
    ki = pl.program_id(2)
    nk = pl.num_programs(2)
    E = q_ref.shape[2]
    D = E // num_heads
    mm_dtype = q_ref.dtype

    @pl.when(ki == 0)
    def _():
        m_ref[...] = jnp.full(m_ref.shape, -jnp.inf, dtype=m_ref.dtype)
        l_ref[...] = jnp.zeros(l_ref.shape, dtype=l_ref.dtype)
        acc_ref[...] = jnp.zeros(acc_ref.shape, dtype=acc_ref.dtype)

    q = q_ref[0]   # (tq,  E)
    k = k_ref[0]   # (tkv, E)
    v = v_ref[0]   # (tkv, E)

    # Static head loop; per-head live ranges are bounded by the scratch stores.
    for h in range(num_heads):
        sl = slice(h * D, (h + 1) * D)       # lane-aligned iff D % 128 == 0
        # Scores: contraction over D, no explicit K transpose.  (tq, tkv) f32.
        s = lax.dot_general(q[:, sl], k[:, sl],
                            dimension_numbers=(((1,), (1,)), ((), ())),
                            preferred_element_type=jnp.float32)
        m_prev = m_ref[h]                                        # (tq, 1)
        m_new = jnp.maximum(m_prev, jnp.max(s, axis=-1, keepdims=True))
        alpha = jnp.exp(m_prev - m_new)
        p = jnp.exp(s - m_new)
        l_ref[h] = alpha * l_ref[h] + jnp.sum(p, axis=-1, keepdims=True)
        # Unnormalized P@V accumulated into the (tq, E) context scratch slice;
        # out-projection is NOT fused per head (review item 1).
        acc_ref[:, sl] = alpha * acc_ref[:, sl] + jnp.dot(
            p.astype(mm_dtype), v[:, sl], preferred_element_type=jnp.float32)
        m_ref[h] = m_new

    @pl.when(ki == nk - 1)
    def _():
        # Deferred per-head normalization; approx reciprocal -> EUP slot (free).
        for h in range(num_heads):
            sl = slice(h * D, (h + 1) * D)
            acc_ref[:, sl] = acc_ref[:, sl] * pl.reciprocal(l_ref[h], approx=True)
        # ONE (tq,E)@(E,E) out-projection (K=E) instead of H tiny-K matmuls.
        out = jnp.dot(acc_ref[...].astype(mm_dtype), w_out_t_ref[...],
                      preferred_element_type=jnp.float32) + b_out_ref[0]
        o_ref[0] = out.astype(o_ref.dtype)


# ------------------------------- wrappers -----------------------------------

def _self_attention_impl(x, w_in_t, b_in2, w_out_t, b_out2, num_heads,
                         mm_dtype, out_dtype, buffered_weights):
    B, S, E = x.shape
    vmem_limit = _vmem_limit_bytes()
    small_vmem = _vmem_capacity_bytes() <= 64 * 1024 * 1024   # v7x
    # Halve the q*kv tile product on v7x relative to v5e/v6e (review item 3).
    tq = _pick_tile(S, 256 if small_vmem else 512)
    tkv = _pick_tile(S, 512)
    ts = _pick_tile(S, 256 if small_vmem else 512)

    # ---- Call 1: fused QKV projection (Q pre-scaled), lane-dense output ----
    q, k, v = pl.pallas_call(
        _qkv_proj_kernel,
        out_shape=(
            jax.ShapeDtypeStruct((B, S, E), mm_dtype),
            jax.ShapeDtypeStruct((B, S, E), mm_dtype),
            jax.ShapeDtypeStruct((B, S, E), mm_dtype),
        ),
        grid_spec=pltpu.PrefetchScalarGridSpec(
            num_scalar_prefetch=0,
            grid=(B, S // ts),
            in_specs=[
                pl.BlockSpec((1, ts, E), lambda b, si: (b, si, 0)),          # x
                _weight_spec((E, 3 * E), lambda b, si: (0, 0),
                             buffered_weights),                              # W_in^T
                pl.BlockSpec((1, 3 * E), lambda b, si: (0, 0)),              # b_in
            ],
            out_specs=[
                pl.BlockSpec((1, ts, E), lambda b, si: (b, si, 0)),
                pl.BlockSpec((1, ts, E), lambda b, si: (b, si, 0)),
                pl.BlockSpec((1, ts, E), lambda b, si: (b, si, 0)),
            ],
        ),
        compiler_params=pltpu.CompilerParams(
            dimension_semantics=("parallel", "parallel"),
            vmem_limit_bytes=vmem_limit,
        ),
    )(x, w_in_t, b_in2)

    # ---- Call 2: flash attention + single out-projection per q tile ----
    return pl.pallas_call(
        functools.partial(_flash_attn_kernel, num_heads=num_heads),
        out_shape=jax.ShapeDtypeStruct((B, S, E), out_dtype),
        grid_spec=pltpu.PrefetchScalarGridSpec(
            num_scalar_prefetch=0,
            grid=(B, S // tq, S // tkv),
            in_specs=[
                pl.BlockSpec((1, tq, E), lambda b, qi, ki: (b, qi, 0)),      # Q
                pl.BlockSpec((1, tkv, E), lambda b, qi, ki: (b, ki, 0)),     # K
                pl.BlockSpec((1, tkv, E), lambda b, qi, ki: (b, ki, 0)),     # V
                _weight_spec((E, E), lambda b, qi, ki: (0, 0),
                             buffered_weights),                              # W_out^T
                pl.BlockSpec((1, E), lambda b, qi, ki: (0, 0)),              # b_out
            ],
            out_specs=pl.BlockSpec((1, tq, E), lambda b, qi, ki: (b, qi, 0)),
            scratch_shapes=[
                pltpu.VMEM((num_heads, tq, 1), jnp.float32),   # running max m
                pltpu.VMEM((num_heads, tq, 1), jnp.float32),   # running sum l
                pltpu.VMEM((tq, E), jnp.float32),              # unnormalized ctx
            ],
        ),
        compiler_params=pltpu.CompilerParams(
            dimension_semantics=("parallel", "parallel", "arbitrary"),
            vmem_limit_bytes=vmem_limit,
        ),
    )(q, k, v, w_out_t, b_out2)


def self_attention_pallas(x, w_in, b_in, w_out, b_out, num_heads,
                          matmul_dtype=None):
    """Equivalent of SelfAttention.forward(x) (attn_mask=None, key_padding_mask=None).

    matmul_dtype: dtype for MXU operands (e.g. jnp.bfloat16 on v5e/v6e/v7x).
                  Defaults to x.dtype. Softmax / accumulation are always f32.
    """
    B, S, E = x.shape
    assert E % num_heads == 0
    assert w_in.shape == (3 * E, E)
    D = E // num_heads
    scale = 1.0 / math.sqrt(D)

    # One-time parameter prep (free layout plumbing in the wrapper):
    #  * fold 1/sqrt(D) into the Q rows of the in-projection weight/bias,
    #  * pre-transpose both projections so the kernels never transpose weights.
    w_in_scaled = jnp.concatenate([w_in[:E] * scale, w_in[E:]], axis=0)
    b_in_scaled = jnp.concatenate([b_in[:E] * scale, b_in[E:]], axis=0)
    w_in_t = w_in_scaled.T          # (E, 3E)
    w_out_t = w_out.T               # (E, E)

    if matmul_dtype is None:
        matmul_dtype = x.dtype
    mm_dtype = jnp.dtype(matmul_dtype)

    x_in = x.astype(mm_dtype)
    w_in_t = w_in_t.astype(mm_dtype)
    w_out_t = w_out_t.astype(mm_dtype)
    b_in2 = b_in_scaled.reshape(1, 3 * E).astype(jnp.float32)
    b_out2 = b_out.reshape(1, E).astype(jnp.float32)

    # Try with single-buffered constant weights first; fall back transparently
    # if this JAX build does not accept pipeline_mode=pl.Buffered(1).
    last_err = None
    for buffered in (True, False):
        try:
            return _self_attention_impl(x_in, w_in_t, b_in2, w_out_t, b_out2,
                                        num_heads, mm_dtype, x.dtype, buffered)
        except Exception as e:  # noqa: BLE001 - retry without pipeline_mode
            last_err = e
    raise last_err


def self_attention_ref(x, w_in, b_in, w_out, b_out, num_heads):
    """Pure-JAX reference matching torch.nn.MultiheadAttention (no masks, no dropout)."""
    B, S, E = x.shape
    D = E // num_heads
    qkv = jnp.einsum('bse,fe->bsf', x, w_in) + b_in
    q, k, v = qkv[..., :E], qkv[..., E:2 * E], qkv[..., 2 * E:]

    def split(t):
        return t.reshape(B, S, num_heads, D).transpose(0, 2, 1, 3)

    q = split(q) / jnp.sqrt(jnp.float32(D))
    k = split(k)
    v = split(v)
    s = jnp.einsum('bhqd,bhkd->bhqk', q, k)
    p = jax.nn.softmax(s, axis=-1)
    o = jnp.einsum('bhqk,bhkd->bhqd', p, v)
    o = o.transpose(0, 2, 1, 3).reshape(B, S, E)
    return jnp.einsum('bse,fe->bsf', o, w_out) + b_out


if __name__ == "__main__":
    B, S, E, H = 2, 8, 32, 4  # batch, seq, embed (input_dim), num_heads

    key = jax.random.PRNGKey(0)
    kx, k1, k2, k3, k4 = jax.random.split(key, 5)

    x = jax.random.normal(kx, (B, S, E), dtype=jnp.float32)
    # Deterministic parameter init (shapes per nn.MultiheadAttention(E, H)).
    w_in = jax.random.normal(k1, (3 * E, E), dtype=jnp.float32) * (1.0 / math.sqrt(E))
    b_in = jax.random.normal(k2, (3 * E,), dtype=jnp.float32) * 0.02
    w_out = jax.random.normal(k3, (E, E), dtype=jnp.float32) * (1.0 / math.sqrt(E))
    b_out = jax.random.normal(k4, (E,), dtype=jnp.float32) * 0.02

    ref = self_attention_ref(x, w_in, b_in, w_out, b_out, H)

    # f32-operand MXU path. Tolerance accounts for the (EUP) approx reciprocal
    # on the softmax denominator (~1e-3 relative), used unconditionally now.
    out = self_attention_pallas(x, w_in, b_in, w_out, b_out, H)
    out = jax.block_until_ready(out)
    assert out.shape == (B, S, E)
    assert jnp.allclose(out, ref, atol=1e-2, rtol=1e-2), "f32 path mismatch vs reference"

    # bf16-operand MXU path (recommended on v5e/v6e/v7x): looser tolerance.
    out_bf16 = self_attention_pallas(x, w_in, b_in, w_out, b_out, H,
                                     matmul_dtype=jnp.bfloat16)
    out_bf16 = jax.block_until_ready(out_bf16)
    assert jnp.allclose(out_bf16, ref, atol=5e-2, rtol=5e-2), "bf16 path mismatch vs reference"

    print("KERNEL_OK")
</pallas_src>

<mosaic_0001>
module attributes {stable_mosaic.version = 11 : i64} {
  func.func @_qkv_proj_kernel(%arg0: i32, %arg1: i32, %arg2: memref<1x8x32xf32, #tpu.memory_space<vmem>>, %arg3: memref<32x96xf32, #tpu.memory_space<vmem>>, %arg4: memref<1x96xf32, #tpu.memory_space<vmem>>, %arg5: memref<1x8x32xf32, #tpu.memory_space<vmem>>, %arg6: memref<1x8x32xf32, #tpu.memory_space<vmem>>, %arg7: memref<1x8x32xf32, #tpu.memory_space<vmem>>) attributes {dimension_semantics = [#tpu.dimension_semantics<parallel>, #tpu.dimension_semantics<parallel>], iteration_bounds = array<i64: 2, 1>, scalar_prefetch = 0 : i64, scratch_operands = 0 : i64, tpu.core_type = #tpu.core_type<tc>, window_params = [{transform_indices = @transform_0, window_bounds = array<i64: 1, 8, 32>}, {pipeline_mode = #tpu.pipeline_mode<synchronous>, transform_indices = @transform_1, window_bounds = array<i64: 32, 96>}, {pipeline_mode = #tpu.pipeline_mode<synchronous>, transform_indices = @transform_2, window_bounds = array<i64: 1, 96>}, {transform_indices = @transform_3, window_bounds = array<i64: 1, 8, 32>}, {transform_indices = @transform_4, window_bounds = array<i64: 1, 8, 32>}, {transform_indices = @transform_5, window_bounds = array<i64: 1, 8, 32>}]} {
    %c0 = arith.constant 0 : index
    %c0_0 = arith.constant 0 : index
    %c0_1 = arith.constant 0 : index
    %0 = vector.load %arg2[%c0, %c0_0, %c0_1] : memref<1x8x32xf32, #tpu.memory_space<vmem>>, vector<1x8x32xf32>
    %1 = vector.shape_cast %0 : vector<1x8x32xf32> to vector<8x32xf32>
    %c0_2 = arith.constant 0 : index
    %c0_3 = arith.constant 0 : index
    %2 = vector.load %arg3[%c0_2, %c0_3] : memref<32x96xf32, #tpu.memory_space<vmem>>, vector<32x96xf32>
    %cst = arith.constant dense<0.000000e+00> : vector<8x96xf32>
    %3 = tpu.matmul %1, %2, %cst {dimension_numbers = #tpu.dot_dimension_numbers<[1], [0], [0], [1], [0, 0, 1, 1], [], []>} : vector<8x32xf32>, vector<32x96xf32>, vector<8x96xf32> -> vector<8x96xf32>
    %c0_4 = arith.constant 0 : index
    %c0_5 = arith.constant 0 : index
    %4 = vector.load %arg4[%c0_4, %c0_5] : memref<1x96xf32, #tpu.memory_space<vmem>>, vector<1x96xf32>
    %5 = vector.shape_cast %4 : vector<1x96xf32> to vector<96xf32>
    %6 = vector.shape_cast %5 : vector<96xf32> to vector<1x96xf32>
    %7 = vector.broadcast %6 : vector<1x96xf32> to vector<8x96xf32>
    %8 = arith.addf %3, %7 : vector<8x96xf32>
    %9 = vector.extract_strided_slice %8 {offsets = [0, 0], sizes = [8, 32], strides = [1, 1]} : vector<8x96xf32> to vector<8x32xf32>
    %c0_6 = arith.constant 0 : index
    %c0_7 = arith.constant 0 : index
    %c0_8 = arith.constant 0 : index
    %10 = vector.load %arg5[%c0_6, %c0_7, %c0_8] : memref<1x8x32xf32, #tpu.memory_space<vmem>>, vector<1x8x32xf32>
    %11 = vector.shape_cast %10 : vector<1x8x32xf32> to vector<8x32xf32>
    %12 = vector.shape_cast %9 : vector<8x32xf32> to vector<1x8x32xf32>
    tpu.vector_store %arg5[%c0_6, %c0_7, %c0_8], %12 {strides = array<i32>} : memref<1x8x32xf32, #tpu.memory_space<vmem>>, vector<1x8x32xf32>,
    %13 = vector.extract_strided_slice %8 {offsets = [0, 32], sizes = [8, 32], strides = [1, 1]} : vector<8x96xf32> to vector<8x32xf32>
    %c0_9 = arith.constant 0 : index
    %c0_10 = arith.constant 0 : index
    %c0_11 = arith.constant 0 : index
    %14 = vector.load %arg6[%c0_9, %c0_10, %c0_11] : memref<1x8x32xf32, #tpu.memory_space<vmem>>, vector<1x8x32xf32>
    %15 = vector.shape_cast %14 : vector<1x8x32xf32> to vector<8x32xf32>
    %16 = vector.shape_cast %13 : vector<8x32xf32> to vector<1x8x32xf32>
    tpu.vector_store %arg6[%c0_9, %c0_10, %c0_11], %16 {strides = array<i32>} : memref<1x8x32xf32, #tpu.memory_space<vmem>>, vector<1x8x32xf32>,
    %17 = vector.extract_strided_slice %8 {offsets = [0, 64], sizes = [8, 32], strides = [1, 1]} : vector<8x96xf32> to vector<8x32xf32>
    %c0_12 = arith.constant 0 : index
    %c0_13 = arith.constant 0 : index
    %c0_14 = arith.constant 0 : index
    %18 = vector.load %arg7[%c0_12, %c0_13, %c0_14] : memref<1x8x32xf32, #tpu.memory_space<vmem>>, vector<1x8x32xf32>
    %19 = vector.shape_cast %18 : vector<1x8x32xf32> to vector<8x32xf32>
    %20 = vector.shape_cast %17 : vector<8x32xf32> to vector<1x8x32xf32>
    tpu.vector_store %arg7[%c0_12, %c0_13, %c0_14], %20 {strides = array<i32>} : memref<1x8x32xf32, #tpu.memory_space<vmem>>, vector<1x8x32xf32>,
    return
  }
  func.func @transform_0(%arg0: i32, %arg1: i32) -> (i32, i32, i32) {
    %c0_i32 = arith.constant 0 : i32
    %c0_i32_0 = arith.constant 0 : i32
    return %arg0, %arg1, %c0_i32 : i32, i32, i32
  }
  func.func @transform_1(%arg0: i32, %arg1: i32) -> (i32, i32) {
    %c0_i32 = arith.constant 0 : i32
    %c0_i32_0 = arith.constant 0 : i32
    %c0_i32_1 = arith.constant 0 : i32
    return %c0_i32, %c0_i32_0 : i32, i32
  }
  func.func @transform_2(%arg0: i32, %arg1: i32) -> (i32, i32) {
    %c0_i32 = arith.constant 0 : i32
    %c0_i32_0 = arith.constant 0 : i32
    %c0_i32_1 = arith.constant 0 : i32
    return %c0_i32, %c0_i32_0 : i32, i32
  }
  func.func @transform_3(%arg0: i32, %arg1: i32) -> (i32, i32, i32) {
    %c0_i32 = arith.constant 0 : i32
    %c0_i32_0 = arith.constant 0 : i32
    return %arg0, %arg1, %c0_i32 : i32, i32, i32
  }
  func.func @transform_4(%arg0: i32, %arg1: i32) -> (i32, i32, i32) {
    %c0_i32 = arith.constant 0 : i32
    %c0_i32_0 = arith.constant 0 : i32
    return %arg0, %arg1, %c0_i32 : i32, i32, i32
  }
  func.func @transform_5(%arg0: i32, %arg1: i32) -> (i32, i32, i32) {
    %c0_i32 = arith.constant 0 : i32
    %c0_i32_0 = arith.constant 0 : i32
    return %arg0, %arg1, %c0_i32 : i32, i32, i32
  }
}

module attributes {stable_mosaic.version = 11 : i64} {
  func.func @_qkv_proj_kernel(%arg0: i32, %arg1: i32, %arg2: memref<1x8x32xf32, #tpu.memory_space<vmem>>, %arg3: memref<32x96xf32, #tpu.memory_space<vmem>>, %arg4: memref<1x96xf32, #tpu.memory_space<vmem>>, %arg5: memref<1x8x32xf32, #tpu.memory_space<vmem>>, %arg6: memref<1x8x32xf32, #tpu.memory_space<vmem>>, %arg7: memref<1x8x32xf32, #tpu.memory_space<vmem>>) attributes {dimension_semantics = [#tpu.dimension_semantics<parallel>, #tpu.dimension_semantics<parallel>], iteration_bounds = array<i64: 2, 1>, scalar_prefetch = 0 : i64, scratch_operands = 0 : i64, tpu.core_type = #tpu.core_type<tc>, window_params = [{transform_indices = @transform_0, window_bounds = array<i64: 1, 8, 32>}, {pipeline_mode = #tpu.pipeline_mode<synchronous>, transform_indices = @transform_1, window_bounds = array<i64: 32, 96>}, {pipeline_mode = #tpu.pipeline_mode<synchronous>, transform_indices = @transform_2, window_bounds = array<i64: 1, 96>}, {transform_indices = @transform_3, window_bounds = array<i64: 1, 8, 32>}, {transform_indices = @transform_4, window_bounds = array<i64: 1, 8, 32>}, {transform_indices = @transform_5, window_bounds = array<i64: 1, 8, 32>}]} {
    %c0 = arith.constant 0 : index
    %c0_0 = arith.constant 0 : index
    %c0_1 = arith.constant 0 : index
    %0 = vector.load %arg2[%c0, %c0_0, %c0_1] : memref<1x8x32xf32, #tpu.memory_space<vmem>>, vector<1x8x32xf32>
    %1 = vector.shape_cast %0 : vector<1x8x32xf32> to vector<8x32xf32>
    %c0_2 = arith.constant 0 : index
    %c0_3 = arith.constant 0 : index
    %2 = vector.load %arg3[%c0_2, %c0_3] : memref<32x96xf32, #tpu.memory_space<vmem>>, vector<32x96xf32>
    %cst = arith.constant dense<0.000000e+00> : vector<8x96xf32>
    %3 = tpu.matmul %1, %2, %cst {dimension_numbers = #tpu.dot_dimension_numbers<[1], [0], [0], [1], [0, 0, 1, 1], [], []>} : vector<8x32xf32>, vector<32x96xf32>, vector<8x96xf32> -> vector<8x96xf32>
    %c0_4 = arith.constant 0 : index
    %c0_5 = arith.constant 0 : index
    %4 = vector.load %arg4[%c0_4, %c0_5] : memref<1x96xf32, #tpu.memory_space<vmem>>, vector<1x96xf32>
    %5 = vector.shape_cast %4 : vector<1x96xf32> to vector<96xf32>
    %6 = vector.shape_cast %5 : vector<96xf32> to vector<1x96xf32>
    %7 = vector.broadcast %6 : vector<1x96xf32> to vector<8x96xf32>
    %8 = arith.addf %3, %7 : vector<8x96xf32>
    %9 = vector.extract_strided_slice %8 {offsets = [0, 0], sizes = [8, 32], strides = [1, 1]} : vector<8x96xf32> to vector<8x32xf32>
    %c0_6 = arith.constant 0 : index
    %c0_7 = arith.constant 0 : index
    %c0_8 = arith.constant 0 : index
    %10 = vector.load %arg5[%c0_6, %c0_7, %c0_8] : memref<1x8x32xf32, #tpu.memory_space<vmem>>, vector<1x8x32xf32>
    %11 = vector.shape_cast %10 : vector<1x8x32xf32> to vector<8x32xf32>
    %12 = vector.shape_cast %9 : vector<8x32xf32> to vector<1x8x32xf32>
    tpu.vector_store %arg5[%c0_6, %c0_7, %c0_8], %12 {strides = array<i32>} : memref<1x8x32xf32, #tpu.memory_space<vmem>>, vector<1x8x32xf32>,
    %13 = vector.extract_strided_slice %8 {offsets = [0, 32], sizes = [8, 32], strides = [1, 1]} : vector<8x96xf32> to vector<8x32xf32>
    %c0_9 = arith.constant 0 : index
    %c0_10 = arith.constant 0 : index
    %c0_11 = arith.constant 0 : index
    %14 = vector.load %arg6[%c0_9, %c0_10, %c0_11] : memref<1x8x32xf32, #tpu.memory_space<vmem>>, vector<1x8x32xf32>
    %15 = vector.shape_cast %14 : vector<1x8x32xf32> to vector<8x32xf32>
    %16 = vector.shape_cast %13 : vector<8x32xf32> to vector<1x8x32xf32>
    tpu.vector_store %arg6[%c0_9, %c0_10, %c0_11], %16 {strides = array<i32>} : memref<1x8x32xf32, #tpu.memory_space<vmem>>, vector<1x8x32xf32>,
    %17 = vector.extract_strided_slice %8 {offsets = [0, 64], sizes = [8, 32], strides = [1, 1]} : vector<8x96xf32> to vector<8x32xf32>
    %c0_12 = arith.constant 0 : index
    %c0_13 = arith.constant 0 : index
    %c0_14 = arith.constant 0 : index
    %18 = vector.load %arg7[%c0_12, %c0_13, %c0_14] : memref<1x8x32xf32, #tpu.memory_space<vmem>>, vector<1x8x32xf32>
    %19 = vector.shape_cast %18 : vector<1x8x32xf32> to vector<8x32xf32>
    %20 = vector.shape_cast %17 : vector<8x32xf32> to vector<1x8x32xf32>
    tpu.vector_store %arg7[%c0_12, %c0_13, %c0_14], %20 {strides = array<i32>} : memref<1x8x32xf32, #tpu.memory_space<vmem>>, vector<1x8x32xf32>,
    return
  }
  func.func @transform_0(%arg0: i32, %arg1: i32) -> (i32, i32, i32) {
    %c0_i32 = arith.constant 0 : i32
    %c0_i32_0 = arith.constant 0 : i32
    return %arg0, %arg1, %c0_i32 : i32, i32, i32
  }
  func.func @transform_1(%arg0: i32, %arg1: i32) -> (i32, i32) {
    %c0_i32 = arith.constant 0 : i32
    %c0_i32_0 = arith.constant 0 : i32
    %c0_i32_1 = arith.constant 0 : i32
    return %c0_i32, %c0_i32_0 : i32, i32
  }
  func.func @transform_2(%arg0: i32, %arg1: i32) -> (i32, i32) {
    %c0_i32 = arith.constant 0 : i32
    %c0_i32_0 = arith.constant 0 : i32
    %c0_i32_1 = arith.constant 0 : i32
    return %c0_i32, %c0_i32_0 : i32, i32
  }
  func.func @transform_3(%arg0: i32, %arg1: i32) -> (i32, i32, i32) {
    %c0_i32 = arith.constant 0 : i32
    %c0_i32_0 = arith.constant 0 : i32
    return %arg0, %arg1, %c0_i32 : i32, i32, i32
  }
  func.func @transform_4(%arg0: i32, %arg1: i32) -> (i32, i32, i32) {
    %c0_i32 = arith.constant 0 : i32
    %c0_i32_0 = arith.constant 0 : i32
    return %arg0, %arg1, %c0_i32 : i32, i32, i32
  }
  func.func @transform_5(%arg0: i32, %arg1: i32) -> (i32, i32, i32) {
    %c0_i32 = arith.constant 0 : i32
    %c0_i32_0 = arith.constant 0 : i32
    return %arg0, %arg1, %c0_i32 : i32, i32, i32
  }
}

</mosaic_0001>

<bundles_post_ra>
// kernel: tpu_custom_call.1
= control target key start
LH: loop header
LB: loop body
LE: loop exit
PB: predicated region body
PF: predicated region fallthrough
CT: control target
= control target key end

     0   :  { %11 = vsyncpa [#allocation3], 0  ;;  %s1375_s0 = inlined_call_operand.hbm [shape: f32[2,8,32], index: 0, kind: input, shape index: {}]   ;;  %s1376_s1 = inlined_call_operand.hbm [shape: f32[32,96], index: 1, kind: input, shape index: {}]   ;;  %s1377_s2 = inlined_call_operand.hbm [shape: f32[1,96], index: 2, kind: input, shape index: {}]   ;;  %s1378_s3 = inlined_call_operand.hbm [shape: f32[2,8,32], index: 3, kind: output, shape index: {0}]   ;;  %s1379_s4 = inlined_call_operand.hbm [shape: f32[2,8,32], index: 4, kind: output, shape index: {1}]   ;;  %s1380_s5 = inlined_call_operand.hbm [shape: f32[2,8,32], index: 5, kind: output, shape index: {2}]  }
   0x1   :  { %13 = vsyncpa [#allocation3 + $0x1], 0 }
   0x2   :  { %14 = vsyncpa [#allocation6], 0 }
   0x3   :  { %15 = vsyncpa [#allocation4], 0 }
   0x4   :  { %17 = vsyncpa [#allocation4 + $0x1], 0 }
   0x5   :  { %18 = vsyncpa [#allocation10], 0 }
   0x6   :  { %20 = vsyncpa [#allocation10 + $0x1], 0  ;;  %s1041_s18 = smov 0   ;;  %s1043_s19 = smov 0  }
   0x7   :  { %s1045_s20 = smov 0   ;;  %s1047_s21 = smov 0  }
   0x8   :  { %s1049_s22 = smov 0   ;;  %s1051_s23 = smov 0  }
   0x9 LB: > { %s1072_s24 = sadd.s32 4294967295, %s996_s23   ;;  %s618_s25 = sadd.s32 4294967294, %s996_s23   ;;  %s996_s23 = sphi %s1051_s23, %s26_s23   ;;  %s992_s22 = sphi %s1049_s22, %s1401_s22   ;;  %s988_s21 = sphi %s1047_s21, %s1400_s21   ;;  %s984_s20 = sphi %s1045_s20, %s1399_s20   ;;  %s980_s19 = sphi %s1043_s19, %s1398_s19   ;;  %s976_s18 = sphi %s1041_s18, %s1397_s18  }
   0xa   : > { %p60_p0 = scmp.ne.s32.totalorder %s980_s19, %s976_s18  ;;  %p1381_p1 = scmp.eq.s32.totalorder %s1072_s24, 0 }
   0xb   : > { %p134_p3 = scmp.eq.s32.totalorder %s618_s25, 1  ;;  %p619_p5 = scmp.ge.s32.totalorder %s996_s23, 1 }
   0xc   : > { %p1083_p4 = por %p1381_p1, %p60_p0  ;;  %p197_p7 = scmp.lt.s32.totalorder %s996_s23, 3 }
   0xd   : > { %p1088_p6 = por %p134_p3, %p60_p0  ;;  %s998_s29 = smov [#allocation5]  }
   0xe   : > { %s1384_s26 = scalar_select %p1083_p4, 1, 0 }
   0xf   : > { %s1385_s27 = scalar_select %p1088_p6, 1, 0 }
  0x10   : > { %p1093_p8 = pnand %p619_p5, %p197_p7  ;;  %s209_s30 = sshll.u32 %s998_s29, 4  ;;  %s1097_s30 = int_to_ptr.vmem [resolvable:$true] %s209_s30 }
  0x11   : > { %s999_s7 = smov [#allocation7]   ;;  %s764_s11 = scalar_lea.hbm %s1376_s1, 512 }
  0x12   : > { %p680_p9 = pneg %p1093_p8  ;;  %s223_s8 = sshll.u32 %s999_s7, 4  ;;  %s1108_s8 = int_to_ptr.vmem [resolvable:$true] %s223_s8 }
  0x13   : > { %p765_p12 = scmp.ne.s32.totalorder %s1376_s1, %s764_s11  ;;  %p771_p5 = scmp.lt.u32.totalorder %s764_s11, %s1376_s1 }
  0x14   : > { %p1104_p11 = pnand %p680_p9, %p1381_p1 }
  0x16   : > { %p766_p13 = pneg %p1104_p11 }
  0x18   : > { %p767_p0 = pnand %p766_p13, %p765_p12 }
  0x1a   : > { %p768_p3 = pneg %p767_p0 }
  0x1c   : > { %p773_p7 = pnand %p771_p5, %p768_p3 }
  0x1e   : > { %776 = shalt.err (!%p773_p7)
}
  0x1f   : > { %s777_s16 = scalar_lea.vmem %s1097_s30, 512  ;;  %p785_p2 = scmp.lt.s32.totalorder %s1097_s30, %s1097_s30 }
  0x20   : > { %p778_p9 = scmp.ne.s32.totalorder %s1097_s30, %s777_s16  ;;  %p786_p12 = scmp.lt.s32.totalorder %s777_s16, %s777_s16 }
  0x22   : > { %p780_p10 = pnand %p778_p9, %p766_p13  ;;  %p787_p0 = por %p786_p12, %p785_p2 }
  0x24   : > { %p781_p1 = pneg %p780_p10 }
  0x26   : > { %p788_p6 = pnand %p787_p0, %p781_p1 }
  0x28   : > { %791 = shalt.err (!%p788_p6)
}
  0x29   : > { %s1000_s17 = smov 128   ;;  %s1001_s29 = smov 8  }
  0x2a   : > { %683 = dma.hbm_to_vmem [thread:$0]  (!%p1104_p11), %s1376_s1, 512, %s1097_s30, [#allocation6], %s1000_s17, %s1000_s17, %s1001_s29  }
  0x2b   : > { %s792_s12 = scalar_lea.hbm %s1377_s2, 16 }
  0x2c   : > { %p793_p2 = scmp.ne.s32.totalorder %s1377_s2, %s792_s12  ;;  %p799_p10 = scmp.lt.u32.totalorder %s792_s12, %s1377_s2 }
  0x2e   : > { %p795_p1 = pnand %p793_p2, %p766_p13 }
  0x30   : > { %p796_p6 = pneg %p795_p1 }
  0x32   : > { %p801_p3 = pnand %p799_p10, %p796_p6 }
  0x34   : > { %804 = shalt.err (!%p801_p3)
}
  0x35   : > { %s805_s30 = scalar_lea.vmem %s1108_s8, 16  ;;  %s812_s17 = scalar_lea.vmem %s1108_s8, 32 }
  0x36   : > { %p806_p5 = scmp.ne.s32.totalorder %s1108_s8, %s805_s30  ;;  %p813_p12 = scmp.lt.s32.totalorder %s1108_s8, %s1108_s8 }
  0x37   : > { %p814_p0 = scmp.lt.s32.totalorder %s812_s17, %s805_s30 }
  0x38   : > { %p808_p7 = pnand %p806_p5, %p766_p13 }
  0x39   : > { %p815_p2 = por %p814_p0, %p813_p12 }
  0x3a   : > { %p809_p9 = pneg %p808_p7 }
  0x3c   : > { %p816_p1 = pnand %p815_p2, %p809_p9 }
  0x3e   : > { %819 = shalt.err (!%p816_p1)
}
  0x3f   : > { %686 = dma.hbm_to_vmem [thread:$0]  (!%p1104_p11), %s1377_s2, 16, %s1108_s8, [#allocation6]  }
  0x40   : > { %s38_s9 = sadd.s32 1, %s992_s22  ;;  %s47_s10 = sadd.s32 1, %s984_s20 }
  0x41   : > { %p40_p13 = scmp.ge.s32.totalorder %s38_s9, 2  ;;  %p54_p6 = scmp.ne.s32.totalorder %s984_s20, %s980_s19 }
  0x42   : > { %p55_p10 = scmp.eq.s32.totalorder %s996_s23, 0  ;;  %p703_p3 = scmp.lt.s32.totalorder %s996_s23, 2 }
  0x43   : > { %s1403_s9 = smov (%p40_p13, %s38_s9), 0  ;;  %p1388_p7 = scmp.eq.s32.totalorder %s1072_s24, 1 }
  0x44   : > { %p56_p5 = por %p55_p10, %p54_p6  ;;  %s42_s11 = ssub.s32 %s992_s22, %s1403_s9 }
  0x45   : > { %p1173_p9 = por %p1388_p7, %p54_p6  ;;  %s234_s12 = sand.u32 1, %s984_s20  }
  0x46   : > { %p45_p12 = scmp.eq.s32.totalorder %s42_s11, 0  ;;  %s623_s8 = sshll.u32 %s234_s12, 3 }
  0x47   : > { %s1389_s6 = scalar_select %p1173_p9, 1, 0 }
  0x48   : > { %s624_s13 = sshll.u32 %s992_s22, 7  ;;  %s238_s17 = scalar_lea.vmem [#allocation2], %s623_s8 }
  0x49   : > { %s1182_s14 = scalar_select %p45_p12, %s984_s20, %s47_s10  }
  0x4a   : > { %s1187_s30 = scalar_lea.hbm %s1375_s0, %s624_s13  ;;  %s246_s29 = sshll.u32 %s238_s17, 4  ;;  %s1195_s29 = int_to_ptr.vmem [resolvable:$true] %s246_s29 }
  0x4b   : > { %p1191_p11 = pnand %p703_p3, %p56_p5  ;;  %s235_s10 = scalar_lea.sflag [#allocation3], %s234_s12 }
  0x4c   : > { %s820_s11 = scalar_lea.hbm %s1187_s30, 128  ;;  %s825_s15 = scalar_lea.hbm %s1375_s0, 256 }
  0x4d   : > { %p821_p0 = scmp.ne.s32.totalorder %s1187_s30, %s820_s11  ;;  %p822_p2 = pneg %p1191_p11 }
  0x4e   : > { %p826_p6 = scmp.lt.u32.totalorder %s1187_s30, %s1375_s0  ;;  %p827_p10 = scmp.lt.u32.totalorder %s825_s15, %s820_s11 }
  0x4f   : > { %p823_p1 = pnand %p822_p2, %p821_p0  ;;  %p829_p5 = scmp.lt.u32.totalorder %s820_s11, %s1187_s30 }
  0x50   : > { %p828_p3 = por %p827_p10, %p826_p6 }
  0x51   : > { %p824_p13 = pneg %p823_p1 }
  0x52   : > { %p830_p7 = por %p829_p5, %p828_p3 }
  0x54   : > { %p831_p12 = pnand %p830_p7, %p824_p13 }
  0x56   : > { %834 = shalt.err (!%p831_p12)
}
  0x57   : > { %s835_s12 = scalar_lea.vmem %s1195_s29, 128  ;;  %s1002_s8 = smov [#allocation2]  }
  0x58   : > { %p836_p0 = scmp.ne.s32.totalorder %s1195_s29, %s835_s12  ;;  %s840_s13 = sshll.u32 %s1002_s8, 4  ;;  %s841_s13 = int_to_ptr.vmem [resolvable:$false] %s840_s13 }
  0x59   : > { %s842_s16 = scalar_lea.vmem %s841_s13, 256  ;;  %p843_p4 = scmp.lt.s32.totalorder %s1195_s29, %s841_s13 }
  0x5a   : > { %p838_p1 = pnand %p836_p0, %p822_p2  ;;  %p844_p6 = scmp.lt.s32.totalorder %s842_s16, %s835_s12 }
  0x5c   : > { %p839_p9 = pneg %p838_p1  ;;  %p845_p10 = por %p844_p6, %p843_p4 }
  0x5e   : > { %p846_p3 = pnand %p845_p10, %p839_p9 }
  0x60   : > { %849 = shalt.err (!%p846_p3)
}
  0x61   : > { %690 = dma.hbm_to_vmem [thread:$0]  (!%p1191_p11), %s1187_s30, 128, %s1195_s29, %s235_s10  }
  0x62   : > { %255 = sbr.rel (%p1093_p8) target bundleno = 485 (0x1e5), region = 32  ;;  %s1225_s11 = sand.u32 (!%p1093_p8), 1, %s980_s19  }
  0x63   : > { %s1228_s15 = sshll.u32 (!%p1093_p8), %s1225_s11, 3  ;;  %s258_s17 = scalar_lea.sflag (!%p1093_p8), [#allocation3], %s1225_s11 }
  0x64   : > { %s261_s12 = scalar_lea.vmem (!%p1093_p8), [#allocation2], %s1228_s15  ;;  %p1391_p4 = scmp.ne.s32.totalorder (!%p1093_p8), %s1384_s26, 0 }
  0x69   : > { %959 = dma.done.wait (%p1391_p4), %s258_s17, 128  }
  0x6a   : > { %961 = vsyncadd (%p1391_p4), %s258_s17, 4294967168  ;;  %p1392_p9 = scmp.eq.s32.totalorder %s1072_s24, 0 }
  0x6c   : > { %963 = dma.done.wait (%p1392_p9), [#allocation6], 528   ;;  %p1393_p8 = pmov %p1392_p9 }
  0x6d   : > { %v1003_v0 = vmov 0.0|0.0   ;;  %vm1004_vm0 = vmmov 0   ;;  %v1005_v1 = vmov 0.0   ;;  %v307_v2 = vld [vmem:[#allocation5] sm:$0xff]  ;;  %v308_v3 = vld [vmem:[#allocation5 + $0x8] sm:$0xff]  ;;  %v309_v4 = vld [vmem:[#allocation5 + $0x10] sm:$0xff] }
  0x6e   : > { %965 = vsyncadd (%p1393_p8), [#allocation6], 4294966768  ;;  %658 = vmatprep.subr.bf16.mxu0 %v1003_v0  ;;  %655 = vmatprep.mubr.msk.f32.mxu0 %vm1004_vm0, %v1005_v1  ;;  %v659_v5 = vpack.c.bf16 %v308_v3, %v307_v2  ;;  %v310_v6 = vld [vmem:[#allocation5 + $0x18] sm:$0xff]  ;;  %vm318_vm1 = vcmask 261120   ;;  %v632_v9 = vld [vmem:[#allocation7] ss:$0 sm:$0xff] }
  0x6f   : > { %v662_v7 = vpack.c.bf16 %v310_v6, %v309_v4  ;;  %v306_v8 = vld [vmem:[%s261_s12] sm:$0xff]  ;;  %s1242_s26 = sshll.u32 %s988_s21, 7  ;;  %s291_s28 = scalar_lea.vmem [#allocation8], %s1228_s15 }
  0x70   : > { %660 = vmatpush3.bf16.msra.mxu0 %v659_v5  ;;  %s427_s30 = sshll.u32 %s291_s28, 4  ;;  %s1249_s10 = scalar_lea.hbm %s1378_s3, %s1242_s26  ;;  %s1251_s30 = int_to_ptr.vmem [resolvable:$true] %s427_s30 }
  0x71   : > { %661 = vmatprep.subr.bf16.mxu0 %v1003_v0  ;;  %s1006_s8 = smov 96   ;;  %s403_s21 = scalar_lea.sflag [#allocation4], %s1225_s11 }
  0x72   : > { %s850_s13 = scalar_lea.vmem %s1251_s30, 128  ;;  %p1394_p2 = scmp.ne.s32.totalorder %s1389_s6, 0 }
  0x73   : > { %p851_p11 = scmp.ne.s32.totalorder %s1251_s30, %s850_s13  ;;  %s1007_s16 = smov [#allocation8]  }
  0x74   : > { %663 = vmatpush3.bf16.msra.mxu0 %v662_v7  ;;  %s854_s17 = sshll.u32 %s1007_s16, 4  ;;  %s855_s17 = int_to_ptr.vmem [resolvable:$false] %s854_s17 }
  0x75   : > { %p852_p13 = pnand %p851_p11, %p1394_p2  ;;  %s856_s12 = scalar_lea.vmem %s855_s17, 256 }
  0x76   : > { %p857_p7 = scmp.lt.s32.totalorder %s1251_s30, %s855_s17  ;;  %p858_p12 = scmp.lt.s32.totalorder %s856_s12, %s850_s13 }
  0x77   : > { %656 = vmatmul.mubr.msk.f32.vlgmr.msra.gmra.mrb[0].mxu0 %vm318_vm1, %v306_v8  ;;  %p853_p5 = pneg %p852_p13 }
  0x78   : > { %p859_p0 = por %p858_p12, %p857_p7 }
  0x7a   : > { %p860_p1 = pnand %p859_p0, %p853_p5 }
 0x14a   : > { %v388_v10 = vpop.f32.mrb[0].mxu0 }
 0x14b   : > { %v389_v11 = vadd.f32 %v632_v9, %v388_v10  ;;  %v657_v12 = vpop.f32.mrb[1].mxu0 }
 0x14d   : > { %394 = vrot.lane.b32.xlu0 %v389_v11, %s1006_s8  ;;  %392 = vst.msk [vmem:[%s291_s28] sm:$0xff] %vm318_vm1, %v389_v11 }
 0x14e   : > { %863 = shalt.err (!%p860_p1)
}
 0x14f   : > { %s864_s11 = scalar_lea.hbm %s1249_s10, 128  ;;  %s868_s7 = scalar_lea.hbm %s1378_s3, 256 }
 0x150   : > { %p865_p6 = scmp.ne.s32.totalorder %s1249_s10, %s864_s11  ;;  %p869_p4 = scmp.lt.u32.totalorder %s1249_s10, %s1378_s3 }
 0x151   : > { %p870_p9 = scmp.lt.u32.totalorder %s868_s7, %s864_s11  ;;  %p872_p11 = scmp.lt.u32.totalorder %s864_s11, %s1249_s10 }
 0x152   : > { %p866_p10 = pnand %p865_p6, %p1394_p2 }
 0x153   : > { %p871_p8 = por %p870_p9, %p869_p4 }
 0x154   : > { %p867_p3 = pneg %p866_p10 }
 0x155   : > { %p873_p13 = por %p872_p11, %p871_p8 }
 0x157   : > { %p874_p5 = pnand %p873_p13, %p867_p3 }
 0x159   : > { %877 = shalt.err (!%p874_p5)
}
 0x15a   : > { %674 = dma.vmem_to_hbm [thread:$0]  (%p1394_p2), %s1251_s30, 128, %s1249_s10, %s403_s21  }
 0x15b   : > { %s1008_s13 = smov 64   ;;  %s407_s17 = sand.u32 1, %s1072_s24  }
 0x15c   : > { %398 = vrot.lane.b32.xlu0 %v389_v11, %s1008_s13  ;;  %s298_s12 = scalar_lea.vmem [#allocation9], %s1228_s15  ;;  %s1282_s7 = scalar_lea.hbm %s1379_s4, %s1242_s26 }
 0x15d   : > { %s441_s28 = sshll.u32 %s298_s12, 4  ;;  %s305_s8 = scalar_lea.vmem [#allocation11], %s1228_s15  ;;  %s1284_s28 = int_to_ptr.vmem [resolvable:$true] %s441_s28 }
 0x15e   : > { %s1289_s16 = sshll.u32 %s305_s8, 4  ;;  %s1292_s24 = scalar_lea.sflag [#allocation10], %s407_s17  ;;  %s1323_s16 = int_to_ptr.vmem [resolvable:$true] %s1289_s16 }
 0x15f   : > { %s878_s30 = scalar_lea.vmem %s1284_s28, 128  ;;  %s1009_s10 = smov [#allocation9]  }
 0x160   : > { %p879_p7 = scmp.ne.s32.totalorder %s1284_s28, %s878_s30  ;;  %s882_s21 = sshll.u32 %s1009_s10, 4  ;;  %s883_s21 = int_to_ptr.vmem [resolvable:$false] %s882_s21 }
 0x161   : > { %s884_s13 = scalar_lea.vmem %s883_s21, 256  ;;  %p885_p1 = scmp.lt.s32.totalorder %s1284_s28, %s883_s21 }
 0x162   : > { %p880_p12 = pnand %p879_p7, %p1394_p2  ;;  %p886_p6 = scmp.lt.s32.totalorder %s884_s13, %s878_s30 }
 0x164   : > { %p881_p0 = pneg %p880_p12  ;;  %p887_p10 = por %p886_p6, %p885_p1 }
 0x166   : > { %p888_p3 = pnand %p887_p10, %p881_p0 }
 0x1bf   : > { %v395_v13 = vpop.permute.xlu0 %394 }
 0x1c0   : > { %397 = vst.msk [vmem:[%s298_s12] sm:$0xff] %vm318_vm1, %v395_v13 }
 0x1c1   : > { %891 = shalt.err (!%p888_p3)
}
 0x1c2   : > { %s892_s17 = scalar_lea.hbm %s1282_s7, 128  ;;  %s896_s29 = scalar_lea.hbm %s1379_s4, 256 }
 0x1c3   : > { %p893_p4 = scmp.ne.s32.totalorder %s1282_s7, %s892_s17  ;;  %p897_p11 = scmp.lt.u32.totalorder %s1282_s7, %s1379_s4 }
 0x1c4   : > { %p898_p13 = scmp.lt.u32.totalorder %s896_s29, %s892_s17  ;;  %p900_p7 = scmp.lt.u32.totalorder %s892_s17, %s1282_s7 }
 0x1c5   : > { %p894_p9 = pnand %p893_p4, %p1394_p2 }
 0x1c6   : > { %p899_p5 = por %p898_p13, %p897_p11 }
 0x1c7   : > { %p895_p8 = pneg %p894_p9 }
 0x1c8   : > { %p901_p12 = por %p900_p7, %p899_p5 }
 0x1ca   : > { %p902_p0 = pnand %p901_p12, %p895_p8 }
 0x1cc   : > { %905 = shalt.err (!%p902_p0)
}
 0x1cd   : > { %675 = dma.vmem_to_hbm [thread:$0]  (%p1394_p2), %s1284_s28, 128, %s1282_s7, %s1292_s24  }
 0x1ce   : > { %s1320_s12 = scalar_lea.hbm %s1380_s5, %s1242_s26  ;;  %v399_v14 = vpop.permute.xlu0 %398  ;;  %s906_s17 = scalar_lea.vmem %s1323_s16, 128 }
 0x1cf   : > { %401 = vst.msk [vmem:[%s305_s8] sm:$0xff] %vm318_vm1, %v399_v14  ;;  %p907_p1 = scmp.ne.s32.totalorder %s1323_s16, %s906_s17  ;;  %s1010_s28 = smov [#allocation11]  }
 0x1d0   : > { %s910_s7 = sshll.u32 %s1010_s28, 4  ;;  %s911_s7 = int_to_ptr.vmem [resolvable:$false] %s910_s7 }
 0x1d1   : > { %p908_p6 = pnand %p907_p1, %p1394_p2  ;;  %s912_s11 = scalar_lea.vmem %s911_s7, 256 }
 0x1d2   : > { %p913_p3 = scmp.lt.s32.totalorder %s1323_s16, %s911_s7  ;;  %p914_p4 = scmp.lt.s32.totalorder %s912_s11, %s906_s17 }
 0x1d3   : > { %p909_p10 = pneg %p908_p6 }
 0x1d4   : > { %p915_p9 = por %p914_p4, %p913_p3 }
 0x1d6   : > { %p916_p8 = pnand %p915_p9, %p909_p10 }
 0x1d8   : > { %919 = shalt.err (!%p916_p8)
}
 0x1d9   : > { %s920_s15 = scalar_lea.hbm %s1320_s12, 128  ;;  %s924_s29 = scalar_lea.hbm %s1380_s5, 256 }
 0x1da   : > { %p921_p11 = scmp.ne.s32.totalorder %s1320_s12, %s920_s15  ;;  %p925_p7 = scmp.lt.u32.totalorder %s1320_s12, %s1380_s5 }
 0x1db   : > { %p926_p12 = scmp.lt.u32.totalorder %s924_s29, %s920_s15  ;;  %p928_p1 = scmp.lt.u32.totalorder %s920_s15, %s1320_s12 }
 0x1dc   : > { %p922_p13 = pnand %p921_p11, %p1394_p2 }
 0x1dd   : > { %p927_p0 = por %p926_p12, %p925_p7 }
 0x1de   : > { %p923_p5 = pneg %p922_p13 }
 0x1df   : > { %p929_p6 = por %p928_p1, %p927_p0 }
 0x1e1   : > { %p930_p10 = pnand %p929_p6, %p923_p5 }
 0x1e3   : > { %933 = shalt.err (!%p930_p10)
}
 0x1e4   : > { %676 = dma.vmem_to_hbm [thread:$0]  (%p1394_p2), %s1323_s16, 128, %s1320_s12, %s1292_s24  }
 0x1e5 PF: > { %s467_s30 = sand.u32 1, %s976_s18   ;;  %p1395_p3 = scmp.ne.s32.totalorder %s1385_s27, 0 }
 0x1e6   : > { %p1396_p4 = scmp.ge.s32.totalorder %s996_s23, 2  ;;  %s468_s13 = scalar_lea.sflag [#allocation4], %s467_s30 }
 0x1e8   : > { %p692_p9 = pnand %p1396_p4, %p1395_p3 }
 0x1ea   : > { %967 = dma.done.wait (!%p692_p9), %s468_s13, 128  }
 0x1eb   : > { %969 = vsyncadd (!%p692_p9), %s468_s13, 4294967168  ;;  %s476_s17 = sand.u32 1, %s618_s25  }
 0x1ec   : > { %s477_s28 = scalar_lea.sflag [#allocation10], %s476_s17 }
 0x1ed   : > { %971 = dma.done.wait (!%p692_p9), %s477_s28, 256  }
 0x1ee   : > { %973 = vsyncadd (!%p692_p9), %s477_s28, 4294967040  ;;  %s26_s23 = sadd.s32 1, %s996_s23   ;;  %s1397_s18 = smov %s980_s19 }
 0x1ef   : > { %p23_p2 = scmp.ge.s32.totalorder %s26_s23, 4   ;;  %s1398_s19 = smov %s984_s20 }
 0x1f0   : > { %s1399_s20 = smov %s1182_s14  ;;  %s1400_s21 = smov %s992_s22 }
 0x1f1   : > { %s1401_s22 = smov %s1403_s9  ;;  %25 = sbr.rel (!%p23_p2) target bundleno = 9 (0x9), region = 117 }
 0x1f8   :  { %491 = vsyncpa [#allocation3], 1 }
 0x1f9   :  { %493 = vsyncpa [#allocation3 + $0x1], 1 }
 0x1fa   :  { %494 = vsyncpa [#allocation6], 1 }
 0x1fb   :  { %495 = vsyncpa [#allocation4], 1 }
 0x1fc   :  { %497 = vsyncpa [#allocation4 + $0x1], 1 }
 0x1fd   :  { %498 = vsyncpa [#allocation10], 1 }
 0x1fe   :  { %500 = vsyncpa [#allocation10 + $0x1], 1 }

// kernel: tpu_custom_call.1
= control target key start
LH: loop header
LB: loop body
LE: loop exit
PB: predicated region body
PF: predicated region fallthrough
CT: control target
= control target key end

     0   :  { %11 = vsyncpa [#allocation3], 0  ;;  %s1375_s0 = inlined_call_operand.hbm [shape: f32[2,8,32], index: 0, kind: input, shape index: {}]   ;;  %s1376_s1 = inlined_call_operand.hbm [shape: f32[32,96], index: 1, kind: input, shape index: {}]   ;;  %s1377_s2 = inlined_call_operand.hbm [shape: f32[1,96], index: 2, kind: input, shape index: {}]   ;;  %s1378_s3 = inlined_call_operand.hbm [shape: f32[2,8,32], index: 3, kind: output, shape index: {0}]   ;;  %s1379_s4 = inlined_call_operand.hbm [shape: f32[2,8,32], index: 4, kind: output, shape index: {1}]   ;;  %s1380_s5 = inlined_call_operand.hbm [shape: f32[2,8,32], index: 5, kind: output, shape index: {2}]  }
   0x1   :  { %13 = vsyncpa [#allocation3 + $0x1], 0 }
   0x2   :  { %14 = vsyncpa [#allocation6], 0 }
   0x3   :  { %15 = vsyncpa [#allocation4], 0 }
   0x4   :  { %17 = vsyncpa [#allocation4 + $0x1], 0 }
   0x5   :  { %18 = vsyncpa [#allocation10], 0 }
   0x6   :  { %20 = vsyncpa [#allocation10 + $0x1], 0  ;;  %s1041_s18 = smov 0   ;;  %s1043_s19 = smov 0  }
   0x7   :  { %s1045_s20 = smov 0   ;;  %s1047_s21 = smov 0  }
   0x8   :  { %s1049_s22 = smov 0   ;;  %s1051_s23 = smov 0  }
   0x9 LB: > { %s1072_s24 = sadd.s32 4294967295, %s996_s23   ;;  %s618_s25 = sadd.s32 4294967294, %s996_s23   ;;  %s996_s23 = sphi %s1051_s23, %s26_s23   ;;  %s992_s22 = sphi %s1049_s22, %s1401_s22   ;;  %s988_s21 = sphi %s1047_s21, %s1400_s21   ;;  %s984_s20 = sphi %s1045_s20, %s1399_s20   ;;  %s980_s19 = sphi %s1043_s19, %s1398_s19   ;;  %s976_s18 = sphi %s1041_s18, %s1397_s18  }
   0xa   : > { %p60_p0 = scmp.ne.s32.totalorder %s980_s19, %s976_s18  ;;  %p1381_p1 = scmp.eq.s32.totalorder %s1072_s24, 0 }
   0xb   : > { %p134_p3 = scmp.eq.s32.totalorder %s618_s25, 1  ;;  %p619_p5 = scmp.ge.s32.totalorder %s996_s23, 1 }
   0xc   : > { %p1083_p4 = por %p1381_p1, %p60_p0  ;;  %p197_p7 = scmp.lt.s32.totalorder %s996_s23, 3 }
   0xd   : > { %p1088_p6 = por %p134_p3, %p60_p0  ;;  %s998_s29 = smov [#allocation5]  }
   0xe   : > { %s1384_s26 = scalar_select %p1083_p4, 1, 0 }
   0xf   : > { %s1385_s27 = scalar_select %p1088_p6, 1, 0 }
  0x10   : > { %p1093_p8 = pnand %p619_p5, %p197_p7  ;;  %s209_s30 = sshll.u32 %s998_s29, 4  ;;  %s1097_s30 = int_to_ptr.vmem [resolvable:$true] %s209_s30 }
  0x11   : > { %s999_s7 = smov [#allocation7]   ;;  %s764_s11 = scalar_lea.hbm %s1376_s1, 512 }
  0x12   : > { %p680_p9 = pneg %p1093_p8  ;;  %s223_s8 = sshll.u32 %s999_s7, 4  ;;  %s1108_s8 = int_to_ptr.vmem [resolvable:$true] %s223_s8 }
  0x13   : > { %p765_p12 = scmp.ne.s32.totalorder %s1376_s1, %s764_s11  ;;  %p771_p5 = scmp.lt.u32.totalorder %s764_s11, %s1376_s1 }
  0x14   : > { %p1104_p11 = pnand %p680_p9, %p1381_p1 }
  0x16   : > { %p766_p13 = pneg %p1104_p11 }
  0x18   : > { %p767_p0 = pnand %p766_p13, %p765_p12 }
  0x1a   : > { %p768_p3 = pneg %p767_p0 }
  0x1c   : > { %p773_p7 = pnand %p771_p5, %p768_p3 }
  0x1e   : > { %776 = shalt.err (!%p773_p7)
}
  0x1f   : > { %s777_s16 = scalar_lea.vmem %s1097_s30, 512  ;;  %p785_p2 = scmp.lt.s32.totalorder %s1097_s30, %s1097_s30 }
  0x20   : > { %p778_p9 = scmp.ne.s32.totalorder %s1097_s30, %s777_s16  ;;  %p786_p12 = scmp.lt.s32.totalorder %s777_s16, %s777_s16 }
  0x22   : > { %p780_p10 = pnand %p778_p9, %p766_p13  ;;  %p787_p0 = por %p786_p12, %p785_p2 }
  0x24   : > { %p781_p1 = pneg %p780_p10 }
  0x26   : > { %p788_p6 = pnand %p787_p0, %p781_p1 }
  0x28   : > { %791 = shalt.err (!%p788_p6)
}
  0x29   : > { %s1000_s17 = smov 128   ;;  %s1001_s29 = smov 8  }
  0x2a   : > { %683 = dma.hbm_to_vmem [thread:$0]  (!%p1104_p11), %s1376_s1, 512, %s1097_s30, [#allocation6], %s1000_s17, %s1000_s17, %s1001_s29  }
  0x2b   : > { %s792_s12 = scalar_lea.hbm %s1377_s2, 16 }
  0x2c   : > { %p793_p2 = scmp.ne.s32.totalorder %s1377_s2, %s792_s12  ;;  %p799_p10 = scmp.lt.u32.totalorder %s792_s12, %s1377_s2 }
  0x2e   : > { %p795_p1 = pnand %p793_p2, %p766_p13 }
  0x30   : > { %p796_p6 = pneg %p795_p1 }
  0x32   : > { %p801_p3 = pnand %p799_p10, %p796_p6 }
  0x34   : > { %804 = shalt.err (!%p801_p3)
}
  0x35   : > { %s805_s30 = scalar_lea.vmem %s1108_s8, 16  ;;  %s812_s17 = scalar_lea.vmem %s1108_s8, 32 }
  0x36   : > { %p806_p5 = scmp.ne.s32.totalorder %s1108_s8, %s805_s30  ;;  %p813_p12 = scmp.lt.s32.totalorder %s1108_s8, %s1108_s8 }
  0x37   : > { %p814_p0 = scmp.lt.s32.totalorder %s812_s17, %s805_s30 }
  0x38   : > { %p808_p7 = pnand %p806_p5, %p766_p13 }
  0x39   : > { %p815_p2 = por %p814_p0, %p813_p12 }
  0x3a   : > { %p809_p9 = pneg %p808_p7 }
  0x3c   : > { %p816_p1 = pnand %p815_p2, %p809_p9 }
  0x3e   : > { %819 = shalt.err (!%p816_p1)
}
  0x3f   : > { %686 = dma.hbm_to_vmem [thread:$0]  (!%p1104_p11), %s1377_s2, 16, %s1108_s8, [#allocation6]  }
  0x40   : > { %s38_s9 = sadd.s32 1, %s992_s22  ;;  %s47_s10 = sadd.s32 1, %s984_s20 }
  0x41   : > { %p40_p13 = scmp.ge.s32.totalorder %s38_s9, 2  ;;  %p54_p6 = scmp.ne.s32.totalorder %s984_s20, %s980_s19 }
  0x42   : > { %p55_p10 = scmp.eq.s32.totalorder %s996_s23, 0  ;;  %p703_p3 = scmp.lt.s32.totalorder %s996_s23, 2 }
  0x43   : > { %s1403_s9 = smov (%p40_p13, %s38_s9), 0  ;;  %p1388_p7 = scmp.eq.s32.totalorder %s1072_s24, 1 }
  0x44   : > { %p56_p5 = por %p55_p10, %p54_p6  ;;  %s42_s11 = ssub.s32 %s992_s22, %s1403_s9 }
  0x45   : > { %p1173_p9 = por %p1388_p7, %p54_p6  ;;  %s234_s12 = sand.u32 1, %s984_s20  }
  0x46   : > { %p45_p12 = scmp.eq.s32.totalorder %s42_s11, 0  ;;  %s623_s8 = sshll.u32 %s234_s12, 3 }
  0x47   : > { %s1389_s6 = scalar_select %p1173_p9, 1, 0 }
  0x48   : > { %s624_s13 = sshll.u32 %s992_s22, 7  ;;  %s238_s17 = scalar_lea.vmem [#allocation2], %s623_s8 }
  0x49   : > { %s1182_s14 = scalar_select %p45_p12, %s984_s20, %s47_s10  }
  0x4a   : > { %s1187_s30 = scalar_lea.hbm %s1375_s0, %s624_s13  ;;  %s246_s29 = sshll.u32 %s238_s17, 4  ;;  %s1195_s29 = int_to_ptr.vmem [resolvable:$true] %s246_s29 }
  0x4b   : > { %p1191_p11 = pnand %p703_p3, %p56_p5  ;;  %s235_s10 = scalar_lea.sflag [#allocation3], %s234_s12 }
  0x4c   : > { %s820_s11 = scalar_lea.hbm %s1187_s30, 128  ;;  %s825_s15 = scalar_lea.hbm %s1375_s0, 256 }
  0x4d   : > { %p821_p0 = scmp.ne.s32.totalorder %s1187_s30, %s820_s11  ;;  %p822_p2 = pneg %p1191_p11 }
  0x4e   : > { %p826_p6 = scmp.lt.u32.totalorder %s1187_s30, %s1375_s0  ;;  %p827_p10 = scmp.lt.u32.totalorder %s825_s15, %s820_s11 }
  0x4f   : > { %p823_p1 = pnand %p822_p2, %p821_p0  ;;  %p829_p5 = scmp.lt.u32.totalorder %s820_s11, %s1187_s30 }
  0x50   : > { %p828_p3 = por %p827_p10, %p826_p6 }
  0x51   : > { %p824_p13 = pneg %p823_p1 }
  0x52   : > { %p830_p7 = por %p829_p5, %p828_p3 }
  0x54   : > { %p831_p12 = pnand %p830_p7, %p824_p13 }
  0x56   : > { %834 = shalt.err (!%p831_p12)
}
  0x57   : > { %s835_s12 = scalar_lea.vmem %s1195_s29, 128  ;;  %s1002_s8 = smov [#allocation2]  }
  0x58   : > { %p836_p0 = scmp.ne.s32.totalorder %s1195_s29, %s835_s12  ;;  %s840_s13 = sshll.u32 %s1002_s8, 4  ;;  %s841_s13 = int_to_ptr.vmem [resolvable:$false] %s840_s13 }
  0x59   : > { %s842_s16 = scalar_lea.vmem %s841_s13, 256  ;;  %p843_p4 = scmp.lt.s32.totalorder %s1195_s29, %s841_s13 }
  0x5a   : > { %p838_p1 = pnand %p836_p0, %p822_p2  ;;  %p844_p6 = scmp.lt.s32.totalorder %s842_s16, %s835_s12 }
  0x5c   : > { %p839_p9 = pneg %p838_p1  ;;  %p845_p10 = por %p844_p6, %p843_p4 }
  0x5e   : > { %p846_p3 = pnand %p845_p10, %p839_p9 }
  0x60   : > { %849 = shalt.err (!%p846_p3)
}
  0x61   : > { %690 = dma.hbm_to_vmem [thread:$0]  (!%p1191_p11), %s1187_s30, 128, %s1195_s29, %s235_s10  }
  0x62   : > { %255 = sbr.rel (%p1093_p8) target bundleno = 485 (0x1e5), region = 32  ;;  %s1225_s11 = sand.u32 (!%p1093_p8), 1, %s980_s19  }
  0x63   : > { %s1228_s15 = sshll.u32 (!%p1093_p8), %s1225_s11, 3  ;;  %s258_s17 = scalar_lea.sflag (!%p1093_p8), [#allocation3], %s1225_s11 }
  0x64   : > { %s261_s12 = scalar_lea.vmem (!%p1093_p8), [#allocation2], %s1228_s15  ;;  %p1391_p4 = scmp.ne.s32.totalorder (!%p1093_p8), %s1384_s26, 0 }
  0x69   : > { %959 = dma.done.wait (%p1391_p4), %s258_s17, 128  }
  0x6a   : > { %961 = vsyncadd (%p1391_p4), %s258_s17, 4294967168  ;;  %p1392_p9 = scmp.eq.s32.totalorder %s1072_s24, 0 }
  0x6c   : > { %963 = dma.done.wait (%p1392_p9), [#allocation6], 528   ;;  %p1393_p8 = pmov %p1392_p9 }
  0x6d   : > { %v1003_v0 = vmov 0.0|0.0   ;;  %vm1004_vm0 = vmmov 0   ;;  %v1005_v1 = vmov 0.0   ;;  %v307_v2 = vld [vmem:[#allocation5] sm:$0xff]  ;;  %v308_v3 = vld [vmem:[#allocation5 + $0x8] sm:$0xff]  ;;  %v309_v4 = vld [vmem:[#allocation5 + $0x10] sm:$0xff] }
  0x6e   : > { %965 = vsyncadd (%p1393_p8), [#allocation6], 4294966768  ;;  %658 = vmatprep.subr.bf16.mxu0 %v1003_v0  ;;  %655 = vmatprep.mubr.msk.f32.mxu0 %vm1004_vm0, %v1005_v1  ;;  %v659_v5 = vpack.c.bf16 %v308_v3, %v307_v2  ;;  %v310_v6 = vld [vmem:[#allocation5 + $0x18] sm:$0xff]  ;;  %vm318_vm1 = vcmask 261120   ;;  %v632_v9 = vld [vmem:[#allocation7] ss:$0 sm:$0xff] }
  0x6f   : > { %v662_v7 = vpack.c.bf16 %v310_v6, %v309_v4  ;;  %v306_v8 = vld [vmem:[%s261_s12] sm:$0xff]  ;;  %s1242_s26 = sshll.u32 %s988_s21, 7  ;;  %s291_s28 = scalar_lea.vmem [#allocation8], %s1228_s15 }
  0x70   : > { %660 = vmatpush3.bf16.msra.mxu0 %v659_v5  ;;  %s427_s30 = sshll.u32 %s291_s28, 4  ;;  %s1249_s10 = scalar_lea.hbm %s1378_s3, %s1242_s26  ;;  %s1251_s30 = int_to_ptr.vmem [resolvable:$true] %s427_s30 }
  0x71   : > { %661 = vmatprep.subr.bf16.mxu0 %v1003_v0  ;;  %s1006_s8 = smov 96   ;;  %s403_s21 = scalar_lea.sflag [#allocation4], %s1225_s11 }
  0x72   : > { %s850_s13 = scalar_lea.vmem %s1251_s30, 128  ;;  %p1394_p2 = scmp.ne.s32.totalorder %s1389_s6, 0 }
  0x73   : > { %p851_p11 = scmp.ne.s32.totalorder %s1251_s30, %s850_s13  ;;  %s1007_s16 = smov [#allocation8]  }
  0x74   : > { %663 = vmatpush3.bf16.msra.mxu0 %v662_v7  ;;  %s854_s17 = sshll.u32 %s1007_s16, 4  ;;  %s855_s17 = int_to_ptr.vmem [resolvable:$false] %s854_s17 }
  0x75   : > { %p852_p13 = pnand %p851_p11, %p1394_p2  ;;  %s856_s12 = scalar_lea.vmem %s855_s17, 256 }
  0x76   : > { %p857_p7 = scmp.lt.s32.totalorder %s1251_s30, %s855_s17  ;;  %p858_p12 = scmp.lt.s32.totalorder %s856_s12, %s850_s13 }
  0x77   : > { %656 = vmatmul.mubr.msk.f32.vlgmr.msra.gmra.mrb[0].mxu0 %vm318_vm1, %v306_v8  ;;  %p853_p5 = pneg %p852_p13 }
  0x78   : > { %p859_p0 = por %p858_p12, %p857_p7 }
  0x7a   : > { %p860_p1 = pnand %p859_p0, %p853_p5 }
 0x14a   : > { %v388_v10 = vpop.f32.mrb[0].mxu0 }
 0x14b   : > { %v389_v11 = vadd.f32 %v632_v9, %v388_v10  ;;  %v657_v12 = vpop.f32.mrb[1].mxu0 }
 0x14d   : > { %394 = vrot.lane.b32.xlu0 %v389_v11, %s1006_s8  ;;  %392 = vst.msk [vmem:[%s291_s28] sm:$0xff] %vm318_vm1, %v389_v11 }
 0x14e   : > { %863 = shalt.err (!%p860_p1)
}
 0x14f   : > { %s864_s11 = scalar_lea.hbm %s1249_s10, 128  ;;  %s868_s7 = scalar_lea.hbm %s1378_s3, 256 }
 0x150   : > { %p865_p6 = scmp.ne.s32.totalorder %s1249_s10, %s864_s11  ;;  %p869_p4 = scmp.lt.u32.totalorder %s1249_s10, %s1378_s3 }
 0x151   : > { %p870_p9 = scmp.lt.u32.totalorder %s868_s7, %s864_s11  ;;  %p872_p11 = scmp.lt.u32.totalorder %s864_s11, %s1249_s10 }
 0x152   : > { %p866_p10 = pnand %p865_p6, %p1394_p2 }
 0x153   : > { %p871_p8 = por %p870_p9, %p869_p4 }
 0x154   : > { %p867_p3 = pneg %p866_p10 }
 0x155   : > { %p873_p13 = por %p872_p11, %p871_p8 }
 0x157   : > { %p874_p5 = pnand %p873_p13, %p867_p3 }
 0x159   : > { %877 = shalt.err (!%p874_p5)
}
 0x15a   : > { %674 = dma.vmem_to_hbm [thread:$0]  (%p1394_p2), %s1251_s30, 128, %s1249_s10, %s403_s21  }
 0x15b   : > { %s1008_s13 = smov 64   ;;  %s407_s17 = sand.u32 1, %s1072_s24  }
 0x15c   : > { %398 = vrot.lane.b32.xlu0 %v389_v11, %s1008_s13  ;;  %s298_s12 = scalar_lea.vmem [#allocation9], %s1228_s15  ;;  %s1282_s7 = scalar_lea.hbm %s1379_s4, %s1242_s26 }
 0x15d   : > { %s441_s28 = sshll.u32 %s298_s12, 4  ;;  %s305_s8 = scalar_lea.vmem [#allocation11], %s1228_s15  ;;  %s1284_s28 = int_to_ptr.vmem [resolvable:$true] %s441_s28 }
 0x15e   : > { %s1289_s16 = sshll.u32 %s305_s8, 4  ;;  %s1292_s24 = scalar_lea.sflag [#allocation10], %s407_s17  ;;  %s1323_s16 = int_to_ptr.vmem [resolvable:$true] %s1289_s16 }
 0x15f   : > { %s878_s30 = scalar_lea.vmem %s1284_s28, 128  ;;  %s1009_s10 = smov [#allocation9]  }
 0x160   : > { %p879_p7 = scmp.ne.s32.totalorder %s1284_s28, %s878_s30  ;;  %s882_s21 = sshll.u32 %s1009_s10, 4  ;;  %s883_s21 = int_to_ptr.vmem [resolvable:$false] %s882_s21 }
 0x161   : > { %s884_s13 = scalar_lea.vmem %s883_s21, 256  ;;  %p885_p1 = scmp.lt.s32.totalorder %s1284_s28, %s883_s21 }
 0x162   : > { %p880_p12 = pnand %p879_p7, %p1394_p2  ;;  %p886_p6 = scmp.lt.s32.totalorder %s884_s13, %s878_s30 }
 0x164   : > { %p881_p0 = pneg %p880_p12  ;;  %p887_p10 = por %p886_p6, %p885_p1 }
 0x166   : > { %p888_p3 = pnand %p887_p10, %p881_p0 }
 0x1bf   : > { %v395_v13 = vpop.permute.xlu0 %394 }
 0x1c0   : > { %397 = vst.msk [vmem:[%s298_s12] sm:$0xff] %vm318_vm1, %v395_v13 }
 0x1c1   : > { %891 = shalt.err (!%p888_p3)
}
 0x1c2   : > { %s892_s17 = scalar_lea.hbm %s1282_s7, 128  ;;  %s896_s29 = scalar_lea.hbm %s1379_s4, 256 }
 0x1c3   : > { %p893_p4 = scmp.ne.s32.totalorder %s1282_s7, %s892_s17  ;;  %p897_p11 = scmp.lt.u32.totalorder %s1282_s7, %s1379_s4 }
 0x1c4   : > { %p898_p13 = scmp.lt.u32.totalorder %s896_s29, %s892_s17  ;;  %p900_p7 = scmp.lt.u32.totalorder %s892_s17, %s1282_s7 }
 0x1c5   : > { %p894_p9 = pnand %p893_p4, %p1394_p2 }
 0x1c6   : > { %p899_p5 = por %p898_p13, %p897_p11 }
 0x1c7   : > { %p895_p8 = pneg %p894_p9 }
 0x1c8   : > { %p901_p12 = por %p900_p7, %p899_p5 }
 0x1ca   : > { %p902_p0 = pnand %p901_p12, %p895_p8 }
 0x1cc   : > { %905 = shalt.err (!%p902_p0)
}
 0x1cd   : > { %675 = dma.vmem_to_hbm [thread:$0]  (%p1394_p2), %s1284_s28, 128, %s1282_s7, %s1292_s24  }
 0x1ce   : > { %s1320_s12 = scalar_lea.hbm %s1380_s5, %s1242_s26  ;;  %v399_v14 = vpop.permute.xlu0 %398  ;;  %s906_s17 = scalar_lea.vmem %s1323_s16, 128 }
 0x1cf   : > { %401 = vst.msk [vmem:[%s305_s8] sm:$0xff] %vm318_vm1, %v399_v14  ;;  %p907_p1 = scmp.ne.s32.totalorder %s1323_s16, %s906_s17  ;;  %s1010_s28 = smov [#allocation11]  }
 0x1d0   : > { %s910_s7 = sshll.u32 %s1010_s28, 4  ;;  %s911_s7 = int_to_ptr.vmem [resolvable:$false] %s910_s7 }
 0x1d1   : > { %p908_p6 = pnand %p907_p1, %p1394_p2  ;;  %s912_s11 = scalar_lea.vmem %s911_s7, 256 }
 0x1d2   : > { %p913_p3 = scmp.lt.s32.totalorder %s1323_s16, %s911_s7  ;;  %p914_p4 = scmp.lt.s32.totalorder %s912_s11, %s906_s17 }
 0x1d3   : > { %p909_p10 = pneg %p908_p6 }
 0x1d4   : > { %p915_p9 = por %p914_p4, %p913_p3 }
 0x1d6   : > { %p916_p8 = pnand %p915_p9, %p909_p10 }
 0x1d8   : > { %919 = shalt.err (!%p916_p8)
}
 0x1d9   : > { %s920_s15 = scalar_lea.hbm %s1320_s12, 128  ;;  %s924_s29 = scalar_lea.hbm %s1380_s5, 256 }
 0x1da   : > { %p921_p11 = scmp.ne.s32.totalorder %s1320_s12, %s920_s15  ;;  %p925_p7 = scmp.lt.u32.totalorder %s1320_s12, %s1380_s5 }
 0x1db   : > { %p926_p12 = scmp.lt.u32.totalorder %s924_s29, %s920_s15  ;;  %p928_p1 = scmp.lt.u32.totalorder %s920_s15, %s1320_s12 }
 0x1dc   : > { %p922_p13 = pnand %p921_p11, %p1394_p2 }
 0x1dd   : > { %p927_p0 = por %p926_p12, %p925_p7 }
 0x1de   : > { %p923_p5 = pneg %p922_p13 }
 0x1df   : > { %p929_p6 = por %p928_p1, %p927_p0 }
 0x1e1   : > { %p930_p10 = pnand %p929_p6, %p923_p5 }
 0x1e3   : > { %933 = shalt.err (!%p930_p10)
}
 0x1e4   : > { %676 = dma.vmem_to_hbm [thread:$0]  (%p1394_p2), %s1323_s16, 128, %s1320_s12, %s1292_s24  }
 0x1e5 PF: > { %s467_s30 = sand.u32 1, %s976_s18   ;;  %p1395_p3 = scmp.ne.s32.totalorder %s1385_s27, 0 }
 0x1e6   : > { %p1396_p4 = scmp.ge.s32.totalorder %s996_s23, 2  ;;  %s468_s13 = scalar_lea.sflag [#allocation4], %s467_s30 }
 0x1e8   : > { %p692_p9 = pnand %p1396_p4, %p1395_p3 }
 0x1ea   : > { %967 = dma.done.wait (!%p692_p9), %s468_s13, 128  }
 0x1eb   : > { %969 = vsyncadd (!%p692_p9), %s468_s13, 4294967168  ;;  %s476_s17 = sand.u32 1, %s618_s25  }
 0x1ec   : > { %s477_s28 = scalar_lea.sflag [#allocation10], %s476_s17 }
 0x1ed   : > { %971 = dma.done.wait (!%p692_p9), %s477_s28, 256  }
 0x1ee   : > { %973 = vsyncadd (!%p692_p9), %s477_s28, 4294967040  ;;  %s26_s23 = sadd.s32 1, %s996_s23   ;;  %s1397_s18 = smov %s980_s19 }
 0x1ef   : > { %p23_p2 = scmp.ge.s32.totalorder %s26_s23, 4   ;;  %s1398_s19 = smov %s984_s20 }
 0x1f0   : > { %s1399_s20 = smov %s1182_s14  ;;  %s1400_s21 = smov %s992_s22 }
 0x1f1   : > { %s1401_s22 = smov %s1403_s9  ;;  %25 = sbr.rel (!%p23_p2) target bundleno = 9 (0x9), region = 117 }
 0x1f8   :  { %491 = vsyncpa [#allocation3], 1 }
 0x1f9   :  { %493 = vsyncpa [#allocation3 + $0x1], 1 }
 0x1fa   :  { %494 = vsyncpa [#allocation6], 1 }
 0x1fb   :  { %495 = vsyncpa [#allocation4], 1 }
 0x1fc   :  { %497 = vsyncpa [#allocation4 + $0x1], 1 }
 0x1fd   :  { %498 = vsyncpa [#allocation10], 1 }
 0x1fe   :  { %500 = vsyncpa [#allocation10 + $0x1], 1 }

</bundles_post_ra>
